<compile_context>
chip_gen: v5e
topology: v5e:2x2
jax: 0.10.0
libtpu: 0.0.40
codegen_flags: <defaults>
</compile_context>

<pallas_src>
import functools

import jax
import jax.numpy as jnp
from jax import lax
from jax.experimental import pallas as pl
from jax.experimental.pallas import tpu as pltpu


def _sdwi_kernel(x_ref, w_ref, b_ref, out_ref, xpad_ref, *,
                 seq_len, max_ks, radius):
    """One (head-group, batch) tile per grid step.

    x_ref   : (1, G, S, D)       activations for this (batch, group)
    w_ref   : (1, K_max, D)      packed depthwise weights for this group
    b_ref   : (1, 1, D)          packed bias for this group
    out_ref : (1, G, S, D)
    xpad_ref: (G, S + 2R, D)     VMEM scratch holding the sequence-halo'd tile
    """
    S = seq_len
    R = radius
    G = x_ref.shape[1]
    D = x_ref.shape[-1]

    # Build the halo'd tile in VMEM: zero halo rows, copy the body.  Done every
    # step (cheap: 2*R rows) so it is correct regardless of megacore sharding.
    if R > 0:
        zeros_halo = jnp.zeros((G, R, D), xpad_ref.dtype)
        xpad_ref[:, :R, :] = zeros_halo
        xpad_ref[:, R + S:, :] = zeros_halo
    xpad_ref[:, R:R + S, :] = x_ref[0]

    w = w_ref[0]                                     # (K_max, D)
    b = b_ref[0]                                     # (1, D)

    # Accumulate in f32, starting from the (broadcast) bias.
    acc = jnp.broadcast_to(b.reshape(1, 1, D).astype(jnp.float32), (G, S, D))

    # Static unroll over the (small) tap count; each tap is a static slice of
    # the halo'd VMEM tile times a lane-dense weight row.
    for j in range(max_ks):
        w_j = w[j:j + 1, :].reshape(1, 1, D).astype(jnp.float32)
        acc = acc + xpad_ref[:, j:j + S, :].astype(jnp.float32) * w_j

    out_ref[0] = acc.astype(out_ref.dtype)


def spatial_depthwise_inception(x, conv_weights, conv_biases, kernels):
    """x: (B, H, S, D).  conv_weights[i]: (D, 1, kernels[i+1]) torch layout,
    conv_biases[i]: (D,).  Returns (B, H, S, D)."""
    B, H, S, D = x.shape
    ng = len(kernels)
    assert H % ng == 0, (H, ng)
    assert ng > 1 and kernels[0] == 1 and all(k % 2 == 1 for k in kernels), kernels
    G = H // ng
    kmax = max(kernels)
    R = kmax // 2

    # --- pack per-group depthwise weights into (ng, kmax, D); group 0 = identity ---
    w_packed = jnp.zeros((ng, kmax, D), jnp.float32)
    w_packed = w_packed.at[0, R, :].set(1.0)                      # identity tap
    b_packed = jnp.zeros((ng, 1, D), jnp.float32)
    for i, k in enumerate(kernels[1:], start=1):
        off = R - k // 2
        wk = conv_weights[i - 1][:, 0, :].T                       # (k, D)
        w_packed = w_packed.at[i, off:off + k, :].set(wk.astype(jnp.float32))
        b_packed = b_packed.at[i, 0, :].set(conv_biases[i - 1].astype(jnp.float32))

    kernel = functools.partial(_sdwi_kernel, seq_len=S, max_ks=kmax, radius=R)

    return pl.pallas_call(
        kernel,
        out_shape=jax.ShapeDtypeStruct((B, H, S, D), x.dtype),
        grid_spec=pltpu.PrefetchScalarGridSpec(
            num_scalar_prefetch=0,
            grid=(ng, B),   # batch innermost -> weights re-DMA'd only when g changes
            in_specs=[
                pl.BlockSpec((1, G, S, D), lambda g, b: (b, g, 0, 0)),   # x
                pl.BlockSpec((1, kmax, D), lambda g, b: (g, 0, 0)),      # weights
                pl.BlockSpec((1, 1, D), lambda g, b: (g, 0, 0)),         # bias
            ],
            out_specs=pl.BlockSpec((1, G, S, D), lambda g, b: (b, g, 0, 0)),
            scratch_shapes=[pltpu.VMEM((G, S + 2 * R, D), x.dtype)],
        ),
        compiler_params=pltpu.CompilerParams(
            dimension_semantics=("parallel", "parallel")),
    )(x, w_packed, b_packed)


def spatial_depthwise_inception_ref(x, conv_weights, conv_biases, kernels):
    """Pure-JAX reference mirroring the PyTorch forward (lax depthwise conv)."""
    B, H, S, D = x.shape
    ng = len(kernels)
    G = H // ng
    outs = [x[:, :G]]
    for i, k in enumerate(kernels[1:]):
        xi = x[:, G * (i + 1):G * (i + 2)]                         # (B, G, S, D)
        lhs = xi.reshape(B * G, S, D).transpose(0, 2, 1)           # (BG, D, S)
        y = lax.conv_general_dilated(
            lhs, conv_weights[i],                                  # rhs: (D, 1, k)
            window_strides=(1,), padding=[(k // 2, k // 2)],
            dimension_numbers=('NCH', 'OIH', 'NCH'),
            feature_group_count=D,
            precision=lax.Precision.HIGHEST)
        y = y + conv_biases[i][None, :, None]
        outs.append(y.transpose(0, 2, 1).reshape(B, G, S, D))
    return jnp.concatenate(outs, axis=1)


if __name__ == "__main__":
    # Small shapes consistent with the module's forward:
    B, H, S, D = 2, 8, 16, 32           # batch, heads, seq_len, head_dim
    KERNELS = [1, 3, 5, 7]              # heads % len(kernels) == 0

    key = jax.random.PRNGKey(0)
    keys = jax.random.split(key, 1 + 2 * (len(KERNELS) - 1))

    x = jax.random.normal(keys[0], (B, H, S, D), jnp.float32)

    conv_weights = []
    conv_biases = []
    for i, k in enumerate(KERNELS[1:]):
        conv_weights.append(
            0.3 * jax.random.normal(keys[1 + 2 * i], (D, 1, k), jnp.float32))
        conv_biases.append(
            0.1 * jax.random.normal(keys[2 + 2 * i], (D,), jnp.float32))

    out = spatial_depthwise_inception(x, conv_weights, conv_biases, KERNELS)
    out = jax.block_until_ready(out)

    ref = spatial_depthwise_inception_ref(x, conv_weights, conv_biases, KERNELS)
    assert out.shape == (B, H, S, D), out.shape
    assert jnp.allclose(out, ref, atol=1e-4, rtol=1e-4), \
        float(jnp.max(jnp.abs(out - ref)))

    print("KERNEL_OK")
</pallas_src>

<mosaic_0001>
module attributes {stable_mosaic.version = 11 : i64} {
  func.func @_sdwi_kernel(%arg0: i32, %arg1: i32, %arg2: memref<1x2x16x32xf32, #tpu.memory_space<vmem>>, %arg3: memref<1x7x32xf32, #tpu.memory_space<vmem>>, %arg4: memref<1x1x32xf32, #tpu.memory_space<vmem>>, %arg5: memref<1x2x16x32xf32, #tpu.memory_space<vmem>>, %arg6: memref<2x22x32xf32, #tpu.memory_space<vmem>>) attributes {dimension_semantics = [#tpu.dimension_semantics<parallel>, #tpu.dimension_semantics<parallel>], iteration_bounds = array<i64: 4, 2>, scalar_prefetch = 0 : i64, scratch_operands = 1 : i64, tpu.core_type = #tpu.core_type<tc>, window_params = [{transform_indices = @transform_0, window_bounds = array<i64: 1, 2, 16, 32>}, {transform_indices = @transform_1, window_bounds = array<i64: 1, 7, 32>}, {transform_indices = @transform_2, window_bounds = array<i64: 1, 1, 32>}, {transform_indices = @transform_3, window_bounds = array<i64: 1, 2, 16, 32>}]} {
    %cst = arith.constant 0.000000e+00 : f32
    %0 = vector.broadcast %cst : f32 to vector<2x3x32xf32>
    %c0 = arith.constant 0 : index
    %c0_0 = arith.constant 0 : index
    %c0_1 = arith.constant 0 : index
    %1 = vector.load %arg6[%c0, %c0_0, %c0_1] : memref<2x22x32xf32, #tpu.memory_space<vmem>>, vector<2x3x32xf32>
    tpu.vector_store %arg6[%c0, %c0_0, %c0_1], %0 {strides = array<i32>} : memref<2x22x32xf32, #tpu.memory_space<vmem>>, vector<2x3x32xf32>,
    %c0_2 = arith.constant 0 : index
    %c19 = arith.constant 19 : index
    %c0_3 = arith.constant 0 : index
    %2 = vector.load %arg6[%c0_2, %c19, %c0_3] : memref<2x22x32xf32, #tpu.memory_space<vmem>>, vector<2x3x32xf32>
    tpu.vector_store %arg6[%c0_2, %c19, %c0_3], %0 {strides = array<i32>} : memref<2x22x32xf32, #tpu.memory_space<vmem>>, vector<2x3x32xf32>,
    %c0_4 = arith.constant 0 : index
    %c0_5 = arith.constant 0 : index
    %c0_6 = arith.constant 0 : index
    %c0_7 = arith.constant 0 : index
    %3 = vector.load %arg2[%c0_4, %c0_5, %c0_6, %c0_7] : memref<1x2x16x32xf32, #tpu.memory_space<vmem>>, vector<1x2x16x32xf32>
    %4 = vector.shape_cast %3 : vector<1x2x16x32xf32> to vector<2x16x32xf32>
    %c0_8 = arith.constant 0 : index
    %c3 = arith.constant 3 : index
    %c0_9 = arith.constant 0 : index
    %5 = vector.load %arg6[%c0_8, %c3, %c0_9] : memref<2x22x32xf32, #tpu.memory_space<vmem>>, vector<2x16x32xf32>
    tpu.vector_store %arg6[%c0_8, %c3, %c0_9], %4 {strides = array<i32>} : memref<2x22x32xf32, #tpu.memory_space<vmem>>, vector<2x16x32xf32>,
    %c0_10 = arith.constant 0 : index
    %c0_11 = arith.constant 0 : index
    %c0_12 = arith.constant 0 : index
    %6 = vector.load %arg3[%c0_10, %c0_11, %c0_12] : memref<1x7x32xf32, #tpu.memory_space<vmem>>, vector<1x7x32xf32>
    %7 = vector.shape_cast %6 : vector<1x7x32xf32> to vector<7x32xf32>
    %c0_13 = arith.constant 0 : index
    %c0_14 = arith.constant 0 : index
    %c0_15 = arith.constant 0 : index
    %8 = vector.load %arg4[%c0_13, %c0_14, %c0_15] : memref<1x1x32xf32, #tpu.memory_space<vmem>>, vector<1x1x32xf32>
    %9 = vector.shape_cast %8 : vector<1x1x32xf32> to vector<1x32xf32>
    %10 = vector.shape_cast %9 : vector<1x32xf32> to vector<1x1x32xf32>
    %11 = vector.shape_cast %10 : vector<1x1x32xf32> to vector<1x1x32xf32>
    %12 = vector.broadcast %11 : vector<1x1x32xf32> to vector<2x16x32xf32>
    %13 = vector.extract_strided_slice %7 {offsets = [0, 0], sizes = [1, 32], strides = [1, 1]} : vector<7x32xf32> to vector<1x32xf32>
    %14 = vector.shape_cast %13 : vector<1x32xf32> to vector<1x1x32xf32>
    %c0_16 = arith.constant 0 : index
    %c0_17 = arith.constant 0 : index
    %c0_18 = arith.constant 0 : index
    %15 = vector.load %arg6[%c0_16, %c0_17, %c0_18] : memref<2x22x32xf32, #tpu.memory_space<vmem>>, vector<2x16x32xf32>
    %16 = vector.broadcast %14 : vector<1x1x32xf32> to vector<2x16x32xf32>
    %17 = arith.mulf %15, %16 : vector<2x16x32xf32>
    %18 = arith.addf %12, %17 : vector<2x16x32xf32>
    %19 = vector.extract_strided_slice %7 {offsets = [1, 0], sizes = [1, 32], strides = [1, 1]} : vector<7x32xf32> to vector<1x32xf32>
    %20 = vector.shape_cast %19 : vector<1x32xf32> to vector<1x1x32xf32>
    %c0_19 = arith.constant 0 : index
    %c1 = arith.constant 1 : index
    %c0_20 = arith.constant 0 : index
    %21 = vector.load %arg6[%c0_19, %c1, %c0_20] : memref<2x22x32xf32, #tpu.memory_space<vmem>>, vector<2x16x32xf32>
    %22 = vector.broadcast %20 : vector<1x1x32xf32> to vector<2x16x32xf32>
    %23 = arith.mulf %21, %22 : vector<2x16x32xf32>
    %24 = arith.addf %18, %23 : vector<2x16x32xf32>
    %25 = vector.extract_strided_slice %7 {offsets = [2, 0], sizes = [1, 32], strides = [1, 1]} : vector<7x32xf32> to vector<1x32xf32>
    %26 = vector.shape_cast %25 : vector<1x32xf32> to vector<1x1x32xf32>
    %c0_21 = arith.constant 0 : index
    %c2 = arith.constant 2 : index
    %c0_22 = arith.constant 0 : index
    %27 = vector.load %arg6[%c0_21, %c2, %c0_22] : memref<2x22x32xf32, #tpu.memory_space<vmem>>, vector<2x16x32xf32>
    %28 = vector.broadcast %26 : vector<1x1x32xf32> to vector<2x16x32xf32>
    %29 = arith.mulf %27, %28 : vector<2x16x32xf32>
    %30 = arith.addf %24, %29 : vector<2x16x32xf32>
    %31 = vector.extract_strided_slice %7 {offsets = [3, 0], sizes = [1, 32], strides = [1, 1]} : vector<7x32xf32> to vector<1x32xf32>
    %32 = vector.shape_cast %31 : vector<1x32xf32> to vector<1x1x32xf32>
    %c0_23 = arith.constant 0 : index
    %c3_24 = arith.constant 3 : index
    %c0_25 = arith.constant 0 : index
    %33 = vector.load %arg6[%c0_23, %c3_24, %c0_25] : memref<2x22x32xf32, #tpu.memory_space<vmem>>, vector<2x16x32xf32>
    %34 = vector.broadcast %32 : vector<1x1x32xf32> to vector<2x16x32xf32>
    %35 = arith.mulf %33, %34 : vector<2x16x32xf32>
    %36 = arith.addf %30, %35 : vector<2x16x32xf32>
    %37 = vector.extract_strided_slice %7 {offsets = [4, 0], sizes = [1, 32], strides = [1, 1]} : vector<7x32xf32> to vector<1x32xf32>
    %38 = vector.shape_cast %37 : vector<1x32xf32> to vector<1x1x32xf32>
    %c0_26 = arith.constant 0 : index
    %c4 = arith.constant 4 : index
    %c0_27 = arith.constant 0 : index
    %39 = vector.load %arg6[%c0_26, %c4, %c0_27] : memref<2x22x32xf32, #tpu.memory_space<vmem>>, vector<2x16x32xf32>
    %40 = vector.broadcast %38 : vector<1x1x32xf32> to vector<2x16x32xf32>
    %41 = arith.mulf %39, %40 : vector<2x16x32xf32>
    %42 = arith.addf %36, %41 : vector<2x16x32xf32>
    %43 = vector.extract_strided_slice %7 {offsets = [5, 0], sizes = [1, 32], strides = [1, 1]} : vector<7x32xf32> to vector<1x32xf32>
    %44 = vector.shape_cast %43 : vector<1x32xf32> to vector<1x1x32xf32>
    %c0_28 = arith.constant 0 : index
    %c5 = arith.constant 5 : index
    %c0_29 = arith.constant 0 : index
    %45 = vector.load %arg6[%c0_28, %c5, %c0_29] : memref<2x22x32xf32, #tpu.memory_space<vmem>>, vector<2x16x32xf32>
    %46 = vector.broadcast %44 : vector<1x1x32xf32> to vector<2x16x32xf32>
    %47 = arith.mulf %45, %46 : vector<2x16x32xf32>
    %48 = arith.addf %42, %47 : vector<2x16x32xf32>
    %49 = vector.extract_strided_slice %7 {offsets = [6, 0], sizes = [1, 32], strides = [1, 1]} : vector<7x32xf32> to vector<1x32xf32>
    %50 = vector.shape_cast %49 : vector<1x32xf32> to vector<1x1x32xf32>
    %c0_30 = arith.constant 0 : index
    %c6 = arith.constant 6 : index
    %c0_31 = arith.constant 0 : index
    %51 = vector.load %arg6[%c0_30, %c6, %c0_31] : memref<2x22x32xf32, #tpu.memory_space<vmem>>, vector<2x16x32xf32>
    %52 = vector.broadcast %50 : vector<1x1x32xf32> to vector<2x16x32xf32>
    %53 = arith.mulf %51, %52 : vector<2x16x32xf32>
    %54 = arith.addf %48, %53 : vector<2x16x32xf32>
    %c0_32 = arith.constant 0 : index
    %c0_33 = arith.constant 0 : index
    %c0_34 = arith.constant 0 : index
    %c0_35 = arith.constant 0 : index
    %55 = vector.load %arg5[%c0_32, %c0_33, %c0_34, %c0_35] : memref<1x2x16x32xf32, #tpu.memory_space<vmem>>, vector<1x2x16x32xf32>
    %56 = vector.shape_cast %55 : vector<1x2x16x32xf32> to vector<2x16x32xf32>
    %57 = vector.shape_cast %54 : vector<2x16x32xf32> to vector<1x2x16x32xf32>
    tpu.vector_store %arg5[%c0_32, %c0_33, %c0_34, %c0_35], %57 {strides = array<i32>} : memref<1x2x16x32xf32, #tpu.memory_space<vmem>>, vector<1x2x16x32xf32>,
    return
  }
  func.func @transform_0(%arg0: i32, %arg1: i32) -> (i32, i32, i32, i32) {
    %c0_i32 = arith.constant 0 : i32
    %c0_i32_0 = arith.constant 0 : i32
    %c0_i32_1 = arith.constant 0 : i32
    return %arg1, %arg0, %c0_i32, %c0_i32_0 : i32, i32, i32, i32
  }
  func.func @transform_1(%arg0: i32, %arg1: i32) -> (i32, i32, i32) {
    %c0_i32 = arith.constant 0 : i32
    %c0_i32_0 = arith.constant 0 : i32
    %c0_i32_1 = arith.constant 0 : i32
    return %arg0, %c0_i32, %c0_i32_0 : i32, i32, i32
  }
  func.func @transform_2(%arg0: i32, %arg1: i32) -> (i32, i32, i32) {
    %c0_i32 = arith.constant 0 : i32
    %c0_i32_0 = arith.constant 0 : i32
    %c0_i32_1 = arith.constant 0 : i32
    return %arg0, %c0_i32, %c0_i32_0 : i32, i32, i32
  }
  func.func @transform_3(%arg0: i32, %arg1: i32) -> (i32, i32, i32, i32) {
    %c0_i32 = arith.constant 0 : i32
    %c0_i32_0 = arith.constant 0 : i32
    %c0_i32_1 = arith.constant 0 : i32
    return %arg1, %arg0, %c0_i32, %c0_i32_0 : i32, i32, i32, i32
  }
}

</mosaic_0001>

<bundles_post_ra>
// kernel: tpu_custom_call.1
= control target key start
LH: loop header
LB: loop body
LE: loop exit
PB: predicated region body
PF: predicated region fallthrough
CT: control target
= control target key end

     0   :  { %8 = vsyncpa [#allocation4], 0  ;;  %s937_s0 = inlined_call_operand.hbm [shape: f32[2,8,16,32], index: 0, kind: input, shape index: {}]   ;;  %s938_s1 = inlined_call_operand.vmem [shape: f32[4,7,32], index: 1, kind: input, shape index: {}]   ;;  %s939_s2 = inlined_call_operand.vmem [shape: f32[4,1,32], index: 2, kind: input, shape index: {}]   ;;  %s940_s3 = inlined_call_operand.hbm [shape: f32[2,8,16,32], index: 3, kind: output, shape index: {}]  }
   0x1   :  { %10 = vsyncpa [#allocation4 + $0x1], 0 }
   0x2   :  { %11 = vsyncpa [#allocation5], 0 }
   0x3   :  { %13 = vsyncpa [#allocation5 + $0x1], 0  ;;  %s748_s12 = smov 0   ;;  %s750_s13 = smov 0  }
   0x4   :  { %s752_s14 = smov 0   ;;  %s754_s15 = smov 0  }
   0x5   :  { %s756_s16 = smov 0   ;;  %s758_s17 = smov 0  }
   0x6   :  { %s760_s18 = smov 0   ;;  %s762_s19 = smov 0  }
   0x7 LB: > { %s487_s20 = sadd.s32 4294967295, %s721_s19   ;;  %s488_s21 = sadd.s32 4294967294, %s721_s19   ;;  %s721_s19 = sphi %s762_s19, %s19_s19   ;;  %s717_s18 = sphi %s760_s18, %s959_s18   ;;  %s713_s17 = sphi %s758_s17, %s958_s17   ;;  %s709_s16 = sphi %s756_s16, %s957_s16   ;;  %s705_s15 = sphi %s754_s15, %s956_s15   ;;  %s701_s14 = sphi %s752_s14, %s955_s14   ;;  %s697_s13 = sphi %s750_s13, %s954_s13   ;;  %s693_s12 = sphi %s748_s12, %s953_s12  }
   0x8   : > { %s28_s22 = sadd.s32 1, %s713_s17  ;;  %s31_s23 = sadd.s32 1, %s717_s18 }
   0x9   : > { %p29_p0 = scmp.ge.s32.totalorder %s28_s22, 2  ;;  %s40_s24 = sadd.s32 1, %s701_s14 }
   0xa   : > { %p47_p1 = scmp.ne.s32.totalorder %s701_s14, %s697_s13  ;;  %p48_p2 = scmp.eq.s32.totalorder %s721_s19, 0 }
   0xb   : > { %s961_s22 = smov (%p29_p0, %s28_s22), 0  ;;  %s963_s23 = smov (!%p29_p0, %s31_s23), %s717_s18 }
   0xc   : > { %943 = sst [smem:[#allocation9_spill]] %s961_s22  ;;  %s35_s25 = ssub.s32 %s713_s17, %s961_s22 }
   0xd   : > { %p801_p3 = por %p48_p2, %p47_p1  ;;  %p33_p4 = scmp.ge.s32.totalorder %s963_s23, 4 }
   0xe   : > { %p53_p5 = scmp.ne.s32.totalorder %s697_s13, %s693_s12  ;;  %p54_p6 = scmp.eq.s32.totalorder %s487_s20, 0 }
   0xf   : > { %p131_p7 = scmp.eq.s32.totalorder %s487_s20, 7  ;;  %s965_s23 = smov (%p33_p4, %s963_s23), 0 }
  0x10   : > { %945 = sst [smem:[#allocation10_spill]] %s965_s23  ;;  %p809_p8 = por %p54_p6, %p53_p5 }
  0x11   : > { %p813_p9 = por %p131_p7, %p47_p1  ;;  %s36_s29 = ssub.s32 %s717_s18, %s965_s23 }
  0x12   : > { %p137_p10 = scmp.eq.s32.totalorder %s488_s21, 7  ;;  %s37_s30 = sor.u32 %s36_s29, %s35_s25 }
  0x13   : > { %p38_p11 = scmp.eq.s32.totalorder %s37_s30, 0  ;;  %p521_p13 = scmp.lt.s32.totalorder %s721_s19, 8 }
  0x14   : > { %p819_p12 = por %p137_p10, %p53_p5  ;;  %s157_s5 = sand.u32 1, %s701_s14  }
  0x15   : > { %s826_s6 = scalar_select %p38_p11, %s701_s14, %s40_s24  }
  0x16   : > { %s491_s7 = sshll.u32 %s157_s5, 5  ;;  %s507_s8 = sshll.u32 %s717_s18, 2 }
  0x17   : > { %949 = sst [smem:[#allocation11_spill]] %s826_s6  ;;  %s494_s9 = sshll.u32 %s713_s17, 4 }
  0x18   : > { %s161_s10 = scalar_lea.vmem [#allocation3], %s491_s7  ;;  %s167_s20 = sadd.s32 %s507_s8, %s494_s9 }
  0x19   : > { %s172_s11 = sshll.u32 %s161_s10, 4  ;;  %s495_s21 = sshll.u32 %s167_s20, 3  ;;  %s173_s11 = int_to_ptr.vmem [resolvable:$true] %s172_s11 }
  0x1a   : > { %p514_p0 = pnand %p521_p13, %p801_p3  ;;  %s169_s30 = scalar_lea.hbm %s937_s0, %s495_s21 }
  0x1b   : > { %s170_s23 = sshll.u32 %s169_s30, 4  ;;  %s158_s24 = scalar_lea.sflag [#allocation4], %s157_s5  ;;  %s171_s23 = int_to_ptr.hbm [resolvable:$true] %s170_s23 }
  0x1c   : > { %s723_s22 = smov 128   ;;  %s724_s6 = smov 8  }
  0x1d   : > { %516 = dma.hbm_to_vmem [thread:$0]  (!%p514_p0), %s171_s23, 512, %s173_s11, %s158_s24, %s723_s22, %s723_s22, %s724_s6  }
  0x1e   : > { %p496_p1 = scmp.ge.s32.totalorder %s721_s19, 1  ;;  %p193_p2 = scmp.lt.s32.totalorder %s721_s19, 9 }
  0x20   : > { %p194_p4 = pnand %p496_p1, %p193_p2 }
  0x21   : > { %s838_s7 = sand.u32 (!%p194_p4), 1, %s697_s13  }
  0x22   : > { %197 = sbr.rel (%p194_p4) target bundleno = 79 (0x4f), region = 32  ;;  %s497_s26 = sshll.u32 (!%p194_p4), %s838_s7, 5 }
  0x23   : > { %s200_s8 = scalar_lea.sflag (!%p194_p4), [#allocation4], %s838_s7  ;;  %s203_s9 = scalar_lea.vmem (!%p194_p4), [#allocation3], %s497_s26 }
  0x27   : > { %684 = dma.done.wait (%p809_p8), %s200_s8, 512  }
  0x28   : > { %686 = vsyncadd (%p809_p8), %s200_s8, 4294966784  ;;  %vm243_vm0 = vcmask 256000   ;;  %p235_p3 = scmp.lt.s32.totalorder %s709_s16, 3  ;;  %v725_v0 = vmov 0.0   ;;  %vm252_vm1 = vcmask 261120   ;;  %v248_v1 = vld [vmem:[%s203_s9] sm:$0xff] }
  0x29   : > { %244 = vst.msk [vmem:[#allocation2] sm:$0x7] %vm243_vm0, %v725_v0  ;;  %v249_v2 = vld [vmem:[%s203_s9 + $0x8] sm:$0xff]  ;;  %v250_v3 = vld [vmem:[%s203_s9 + $0x10] sm:$0xff]  ;;  %v251_v4 = vld [vmem:[%s203_s9 + $0x18] sm:$0xff]  ;;  %s508_s21 = sshll.u32 %s709_s16, 2 }
  0x2a   : > { %245 = vst.msk [vmem:[#allocation2 + $0x18] sm:$0x7] %vm243_vm0, %v725_v0  ;;  %s236_s22 = scalar_select %p235_p3, %s709_s16, 3 }
  0x2b   : > { %246 = vst.msk [vmem:[#allocation2 + $0x13] sm:$0x7] %vm243_vm0, %v725_v0  ;;  %s503_s25 = sshll.u32 %s705_s15, 4  ;;  %s233_s8 = scalar_lea.vmem [#allocation6], %s497_s26 }
  0x2c   : > { %247 = vst.msk [vmem:[#allocation2 + $0x2b] sm:$0x7] %vm243_vm0, %v725_v0  ;;  %s499_s23 = sshll.u32 %s236_s22, 3  ;;  %s241_s20 = scalar_lea.vmem %s939_s2, %s236_s22 }
  0x2d   : > { %s238_s10 = scalar_lea.vmem %s938_s1, %s499_s23  ;;  %253 = vst.msk [vmem:[#allocation2 + $0x3] sm:$0xff] %vm252_vm1, %v248_v1  ;;  %v592_v7 = vld [vmem:[%s241_s20] ss:$0 sm:$0xff]  ;;  %s873_s15 = sadd.s32 %s508_s21, %s503_s25 }
  0x2e   : > { %254 = vst.msk [vmem:[#allocation2 + $0xb] sm:$0xff] %vm252_vm1, %v249_v2  ;;  %v257_v5 = vld [vmem:[%s238_s10] sm:$0x7f]  ;;  %s504_s16 = sshll.u32 %s873_s15, 3  ;;  %s373_s9 = sshll.u32 %s233_s8, 4  ;;  %s374_s9 = int_to_ptr.vmem [resolvable:$true] %s373_s9 }
  0x2f   : > { %255 = vst.msk [vmem:[#allocation2 + $0x1b] sm:$0xff] %vm252_vm1, %v250_v3  ;;  %v266_v6 = vperm.slane %v257_v5, 0  ;;  %v279_v8 = vperm.slane %v257_v5, 1  ;;  %v292_v12 = vperm.slane %v257_v5, 2  ;;  %v860_v18 = vperm.slane %v257_v5, 3  ;;  %s372_s24 = scalar_lea.hbm %s940_s3, %s504_s16  ;;  %s358_s26 = scalar_lea.sflag [#allocation5], %s838_s7 }
  0x30   : > { %256 = vst.msk [vmem:[#allocation2 + $0x23] sm:$0xff] %vm252_vm1, %v251_v4  ;;  %v862_v21 = vperm.slane %v257_v5, 4  ;;  %v864_v30 = vperm.slane %v257_v5, 5  ;;  %v869_v41 = vperm.slane %v257_v5, 6  ;;  %s375_s22 = sshll.u32 %s372_s24, 4  ;;  %s643_s27 = scalar_lea.hbm %s940_s3, 256  ;;  %s376_s22 = int_to_ptr.hbm [resolvable:$true] %s375_s22 }
  0x31   : > { %s637_s23 = sshra.s32 %s376_s22, 4  ;;  %s638_s23 = int_to_ptr.hbm [resolvable:$true] %s637_s23 }
  0x32   : > { %s639_s5 = scalar_lea.hbm %s638_s23, 32  ;;  %p644_p8 = scmp.lt.s32.totalorder %s638_s23, %s940_s3 }
  0x33   : > { %p640_p5 = scmp.ne.s32.totalorder %s638_s23, %s639_s5  ;;  %p645_p10 = scmp.lt.s32.totalorder %s643_s27, %s639_s5 }
  0x34   : > { %v262_v9 = vld [vmem:[#allocation2] sm:$0xff] }
  0x35   : > { %v275_v10 = vld [vmem:[#allocation2 + $0x1] sm:$0xff]  ;;  %v267_v11 = vmul.f32 %v266_v6, %v262_v9  ;;  %v276_v15 = vld [vmem:[#allocation2 + $0x9] sm:$0xff]  ;;  %p641_p6 = pnand %p640_p5, %p813_p9  ;;  %p646_p11 = por %p645_p10, %p644_p8 }
  0x36   : > { %v288_v13 = vld [vmem:[#allocation2 + $0x2] sm:$0xff]  ;;  %v280_v17 = vmul.f32 %v279_v8, %v275_v10  ;;  %v289_v22 = vld [vmem:[#allocation2 + $0xa] sm:$0xff]  ;;  %v264_v23 = vld [vmem:[#allocation2 + $0x18] sm:$0xff]  ;;  %v281_v27 = vmul.f32 %v279_v8, %v276_v15 }
  0x37   : > { %v263_v14 = vld [vmem:[#allocation2 + $0x8] sm:$0xff]  ;;  %v271_v16 = vadd.f32 %v592_v7, %v267_v11  ;;  %v293_v25 = vmul.f32 %v292_v12, %v288_v13  ;;  %v277_v28 = vld [vmem:[#allocation2 + $0x19] sm:$0xff]  ;;  %v269_v32 = vmul.f32 %v266_v6, %v264_v23  ;;  %v294_v36 = vmul.f32 %v292_v12, %v289_v22  ;;  %p642_p7 = pneg %p641_p6 }
  0x38   : > { %v268_v19 = vmul.f32 %v266_v6, %v263_v14  ;;  %v301_v20 = vld [vmem:[#allocation2 + $0x3] sm:$0xff]  ;;  %v302_v31 = vld [vmem:[#allocation2 + $0xb] sm:$0xff]  ;;  %v290_v37 = vld [vmem:[#allocation2 + $0x1a] sm:$0xff]  ;;  %v282_v44 = vmul.f32 %v279_v8, %v277_v28 }
  0x39   : > { %v284_v24 = vadd.f32 %v280_v17, %v271_v16  ;;  %v314_v29 = vld [vmem:[#allocation2 + $0x4] sm:$0xff]  ;;  %v306_v34 = vmul.f32 %v860_v18, %v301_v20  ;;  %v315_v42 = vld [vmem:[#allocation2 + $0xc] sm:$0xff]  ;;  %v273_v43 = vadd.f32 %v592_v7, %v269_v32  ;;  %v307_v49 = vmul.f32 %v860_v18, %v302_v31  ;;  %v303_v50 = vld [vmem:[#allocation2 + $0x1b] sm:$0xff]  ;;  %p647_p13 = pnand %p646_p11, %p642_p7 }
  0x3a   : > { %v272_v26 = vadd.f32 %v592_v7, %v268_v19  ;;  %v265_v38 = vld [vmem:[#allocation2 + $0x20] sm:$0xff]  ;;  %v319_v47 = vmul.f32 %v862_v21, %v314_v29  ;;  %v328_v53 = vld [vmem:[#allocation2 + $0xd] sm:$0xff]  ;;  %v295_v55 = vmul.f32 %v292_v12, %v290_v37  ;;  %v320_v61 = vmul.f32 %v862_v21, %v315_v42 }
  0x3b   : > { %v297_v33 = vadd.f32 %v293_v25, %v284_v24  ;;  %v278_v39 = vld [vmem:[#allocation2 + $0x21] sm:$0xff]  ;;  %v270_v45 = vmul.f32 %v266_v6, %v265_v38  ;;  %v286_v54 = vadd.f32 %v282_v44, %v273_v43  ;;  %v341_v0 = vld [vmem:[#allocation2 + $0xe] sm:$0xff]  ;;  %v308_v2 = vmul.f32 %v860_v18, %v303_v50 }
  0x3c   : > { %v285_v35 = vadd.f32 %v281_v27, %v272_v26  ;;  %v327_v40 = vld [vmem:[#allocation2 + $0x5] sm:$0xff]  ;;  %v283_v57 = vmul.f32 %v279_v8, %v278_v39  ;;  %v316_v62 = vld [vmem:[#allocation2 + $0x1c] sm:$0xff]  ;;  %v333_v8 = vmul.f32 %v864_v30, %v328_v53 }
  0x3d   : > { %v310_v46 = vadd.f32 %v306_v34, %v297_v33  ;;  %v291_v51 = vld [vmem:[#allocation2 + $0x22] sm:$0xff]  ;;  %v274_v56 = vadd.f32 %v592_v7, %v270_v45  ;;  %v332_v59 = vmul.f32 %v864_v30, %v327_v40  ;;  %v299_v1 = vadd.f32 %v295_v55, %v286_v54 }
  0x3e   : > { %v298_v48 = vadd.f32 %v294_v36, %v285_v35  ;;  %v340_v52 = vld [vmem:[#allocation2 + $0x6] sm:$0xff]  ;;  %v296_v4 = vmul.f32 %v292_v12, %v291_v51  ;;  %v329_v9 = vld [vmem:[#allocation2 + $0x1d] sm:$0xff]  ;;  %v321_v13 = vmul.f32 %v862_v21, %v316_v62  ;;  %v346_v12 = vmul.f32 %v869_v41, %v341_v0 }
  0x3f   : > { %v323_v58 = vadd.f32 %v319_v47, %v310_v46  ;;  %v304_v63 = vld [vmem:[#allocation2 + $0x23] sm:$0xff]  ;;  %v287_v3 = vadd.f32 %v283_v57, %v274_v56  ;;  %v345_v6 = vmul.f32 %v869_v41, %v340_v52  ;;  %v312_v11 = vadd.f32 %v308_v2, %v299_v1 }
  0x40   : > { %v311_v60 = vadd.f32 %v307_v49, %v298_v48  ;;  %v317_v10 = vld [vmem:[#allocation2 + $0x24] sm:$0xff]  ;;  %v309_v15 = vmul.f32 %v860_v18, %v304_v63  ;;  %v334_v23 = vmul.f32 %v864_v30, %v329_v9 }
  0x41   : > { %v336_v5 = vadd.f32 %v332_v59, %v323_v58  ;;  %v300_v14 = vadd.f32 %v296_v4, %v287_v3  ;;  %v342_v19 = vld [vmem:[#allocation2 + $0x1e] sm:$0xff]  ;;  %v325_v22 = vadd.f32 %v321_v13, %v312_v11  ;;  %v322_v25 = vmul.f32 %v862_v21, %v317_v10  ;;  %v343_v26 = vld [vmem:[#allocation2 + $0x26] sm:$0xff] }
  0x42   : > { %v324_v7 = vadd.f32 %v320_v61, %v311_v60  ;;  %v330_v20 = vld [vmem:[#allocation2 + $0x25] sm:$0xff]  ;;  %v347_v28 = vmul.f32 %v869_v41, %v342_v19  ;;  %v348_v33 = vmul.f32 %v869_v41, %v343_v26 }
  0x43   : > { %v349_v16 = vadd.f32 %v345_v6, %v336_v5  ;;  %v313_v24 = vadd.f32 %v309_v15, %v300_v14  ;;  %v338_v27 = vadd.f32 %v334_v23, %v325_v22  ;;  %v335_v31 = vmul.f32 %v864_v30, %v330_v20 }
  0x44   : > { %v337_v17 = vadd.f32 %v333_v8, %v324_v7 }
  0x45   : > { %353 = vst.msk [vmem:[%s233_s8] sm:$0xff] %vm252_vm1, %v349_v16  ;;  %v326_v29 = vadd.f32 %v322_v25, %v313_v24  ;;  %v351_v21 = vadd.f32 %v347_v28, %v338_v27 }
  0x46   : > { %v350_v18 = vadd.f32 %v346_v12, %v337_v17 }
  0x47   : > { %v339_v32 = vadd.f32 %v335_v31, %v326_v29  ;;  %355 = vst.msk [vmem:[%s233_s8 + $0x10] sm:$0xff] %vm252_vm1, %v351_v21 }
  0x48   : > { %354 = vst.msk [vmem:[%s233_s8 + $0x8] sm:$0xff] %vm252_vm1, %v350_v18 }
  0x49   : > { %v352_v34 = vadd.f32 %v348_v33, %v339_v32 }
  0x4b   : > { %356 = vst.msk [vmem:[%s233_s8 + $0x18] sm:$0xff] %vm252_vm1, %v352_v34 }
  0x4c   : > { %650 = shalt.err (!%p647_p13)
}
  0x4d   : > { %s726_s7 = smov 128   ;;  %s727_s21 = smov 8  }
  0x4e   : > { %511 = dma.vmem_to_hbm [thread:$0]  (%p813_p9), %s374_s9, 512, %s376_s22, %s358_s26, %s726_s7, %s726_s7, %s727_s21  }
  0x4f PF: > { %p522_p0 = scmp.ge.s32.totalorder %s721_s19, 2  ;;  %s390_s25 = sand.u32 1, %s693_s12  }
  0x50   : > { %s391_s15 = scalar_lea.sflag [#allocation5], %s390_s25 }
  0x51   : > { %p518_p1 = pnand %p522_p0, %p819_p12 }
  0x53   : > { %p519_p2 = pneg %p518_p1 }
  0x55   : > { %688 = dma.done.wait (%p519_p2), %s391_s15, 512  }
  0x56   : > { %690 = vsyncadd (%p519_p2), %s391_s15, 4294966784  ;;  %s19_s19 = sadd.s32 1, %s721_s19   ;;  %s950_s16 = sld [smem:[#allocation11_spill]] }
  0x57   : > { %p16_p4 = scmp.ge.s32.totalorder %s19_s19, 10   ;;  %s951_s28 = sld [smem:[#allocation9_spill]] }
  0x58   : > { %s952_s29 = sld [smem:[#allocation10_spill]]  ;;  %s953_s12 = smov %s697_s13 }
  0x59   : > { %s954_s13 = smov %s701_s14  ;;  %s956_s15 = smov %s713_s17 }
  0x5a   :  { %18 = sbr.rel (!%p16_p4) target bundleno = 7 (0x7), region = 83 }
  0x5c   : > { %s955_s14 = smov %s950_s16  ;;  %s957_s16 = smov %s717_s18 }
  0x5d   : > { %s958_s17 = smov %s951_s28 }
  0x5e   : > { %s959_s18 = smov %s952_s29 }
  0x5f   :  { %397 = vsyncpa [#allocation4], 1 }
  0x60   :  { %399 = vsyncpa [#allocation4 + $0x1], 1 }
  0x61   :  { %400 = vsyncpa [#allocation5], 1 }
  0x62   :  { %402 = vsyncpa [#allocation5 + $0x1], 1 }

</bundles_post_ra>
